<compile_context>
chip_gen: v5e
topology: v5e:2x2
jax: 0.10.0
libtpu: 0.0.40
codegen_flags: <defaults>
</compile_context>

<pallas_src>
import math

import jax
import jax.numpy as jnp
from jax.experimental import pallas as pl
from jax.experimental.pallas import tpu as pltpu


def _flash_sdpa_kernel(scale_ref, q_ref, k_ref, v_ref, o_ref, m_sc, l_sc, acc_sc):
    # scale_ref: SMEM (1,) f32   (scalar prefetch)
    # q_ref:  (bb, tq, D)   k_ref/v_ref: (bb, tk, D)   o_ref: (bb, tq, D)
    # m_sc/l_sc: VMEM (bb, tq, 1) f32   acc_sc: VMEM (bb, tq, D) f32
    kv = pl.program_id(2)

    @pl.when(kv == 0)
    def _init():
        m_sc[...] = jnp.full_like(m_sc, -jnp.inf)
        l_sc[...] = jnp.zeros_like(l_sc)
        acc_sc[...] = jnp.zeros_like(acc_sc)

    # Fold the scale into Q (touches tq*D elements instead of tq*tk scores).
    inv_scale = scale_ref[0]
    q = q_ref[...] * inv_scale.astype(q_ref.dtype)

    # (bb, tq, tk) scores: contract D of Q with D of K — no explicit K transpose.
    s = jax.lax.dot_general(
        q,
        k_ref[...],
        dimension_numbers=(((2,), (2,)), ((0,), (0,))),
        preferred_element_type=jnp.float32,
    )

    # Online softmax update.
    m_prev = m_sc[...]
    m_new = jnp.maximum(m_prev, jnp.max(s, axis=-1, keepdims=True))
    alpha = jnp.exp(m_prev - m_new)
    p = jnp.exp(s - m_new)

    l_sc[...] = alpha * l_sc[...] + jnp.sum(p, axis=-1, keepdims=True)
    acc_sc[...] = alpha * acc_sc[...] + jax.lax.dot_general(
        p.astype(v_ref.dtype),
        v_ref[...],
        dimension_numbers=(((2,), (1,)), ((0,), (0,))),
        preferred_element_type=jnp.float32,
    )
    m_sc[...] = m_new

    # TODO(synk): training-mode dropout (p=0.1) is stochastic; eval-mode
    # (identity) semantics are implemented here.

    @pl.when(kv == pl.num_programs(2) - 1)
    def _finalize():
        l = l_sc[...]
        r = pl.reciprocal(l, approx=True)  # EUP vrcp — its own VLIW slot
        r = r * (2.0 - l * r)              # one Newton step; negligible VPU cost
        o_ref[...] = (acc_sc[...] * r).astype(o_ref.dtype)


def _pick_seq_block(full, want):
    """Largest block <= want that divides `full` and keeps (8,*) sublane alignment."""
    want = min(want, full)
    if want == full:
        return full
    for b in range(want, 0, -1):
        if full % b == 0 and b % 8 == 0:
            return b
    return full


def _pick_leading(full, want):
    want = max(1, min(want, full))
    while full % want:
        want -= 1
    return want


def sdpa(q, k, v, scale_factor=None, *, block_b=8, block_q=128, block_k=256):
    """Pallas flash-SDPA implementation of Model.forward (eval mode)."""
    B, Sq, D = q.shape
    _, Sk, _ = k.shape
    assert k.shape == (B, Sk, D) and v.shape == (B, Sk, D)

    bb = _pick_leading(B, block_b)
    tq = _pick_seq_block(Sq, block_q)
    tk = _pick_seq_block(Sk, block_k)

    inv_scale = jnp.asarray(
        [1.0 if scale_factor is None else 1.0 / float(scale_factor)],
        dtype=jnp.float32,
    )

    grid = (B // bb, Sq // tq, Sk // tk)

    return pl.pallas_call(
        _flash_sdpa_kernel,
        out_shape=jax.ShapeDtypeStruct((B, Sq, D), q.dtype),
        grid_spec=pltpu.PrefetchScalarGridSpec(
            num_scalar_prefetch=1,  # inv_scale -> SMEM, passed to index_maps too
            grid=grid,
            in_specs=[
                pl.BlockSpec((bb, tq, D), lambda bi, qi, ki, s: (bi, qi, 0)),
                pl.BlockSpec((bb, tk, D), lambda bi, qi, ki, s: (bi, ki, 0)),
                pl.BlockSpec((bb, tk, D), lambda bi, qi, ki, s: (bi, ki, 0)),
            ],
            out_specs=pl.BlockSpec((bb, tq, D), lambda bi, qi, ki, s: (bi, qi, 0)),
            scratch_shapes=[
                pltpu.VMEM((bb, tq, 1), jnp.float32),   # running max m
                pltpu.VMEM((bb, tq, 1), jnp.float32),   # running denom l
                pltpu.VMEM((bb, tq, D), jnp.float32),   # output accumulator
            ],
        ),
        compiler_params=pltpu.CompilerParams(
            dimension_semantics=("parallel", "parallel", "arbitrary"),
            vmem_limit_bytes=64 * 1024 * 1024,
        ),
    )(inv_scale, q, k, v)


def sdpa_ref(q, k, v, scale_factor=None):
    s = jnp.einsum("bqd,bkd->bqk", q, k)
    if scale_factor is not None:
        s = s / scale_factor
    p = jax.nn.softmax(s, axis=-1)
    return jnp.einsum("bqk,bkd->bqd", p, v)


if __name__ == "__main__":
    key = jax.random.PRNGKey(0)
    kq, kk, kv_key = jax.random.split(key, 3)

    # Small shapes consistent with the module's (batch, seq, dim) attention.
    B, Sq, Sk, D = 2, 16, 32, 32
    q = jax.random.normal(kq, (B, Sq, D), dtype=jnp.float32)
    k = jax.random.normal(kk, (B, Sk, D), dtype=jnp.float32)
    v = jax.random.normal(kv_key, (B, Sk, D), dtype=jnp.float32)

    scale = math.sqrt(D)

    # Small tiles here so the online-softmax KV loop actually iterates (2 steps)
    # and the init/accumulate/finalize phases are all exercised.
    out = sdpa(q, k, v, scale_factor=scale, block_b=2, block_q=8, block_k=16)
    out = jax.block_until_ready(out)

    ref = sdpa_ref(q, k, v, scale_factor=scale)
    assert out.shape == (B, Sq, D)
    assert jnp.allclose(out, ref, atol=1e-3, rtol=1e-3), "mismatch vs reference"

    print("KERNEL_OK")
</pallas_src>

<mosaic_0001>
module attributes {stable_mosaic.version = 11 : i64} {
  func.func @_flash_sdpa_kernel(%arg0: i32, %arg1: i32, %arg2: i32, %arg3: memref<1xf32, #tpu.memory_space<smem>>, %arg4: memref<2x8x32xf32, #tpu.memory_space<vmem>>, %arg5: memref<2x16x32xf32, #tpu.memory_space<vmem>>, %arg6: memref<2x16x32xf32, #tpu.memory_space<vmem>>, %arg7: memref<2x8x32xf32, #tpu.memory_space<vmem>>, %arg8: memref<2x8x1xf32, #tpu.memory_space<vmem>>, %arg9: memref<2x8x1xf32, #tpu.memory_space<vmem>>, %arg10: memref<2x8x32xf32, #tpu.memory_space<vmem>>) attributes {dimension_semantics = [#tpu.dimension_semantics<parallel>, #tpu.dimension_semantics<parallel>, #tpu.dimension_semantics<arbitrary>], iteration_bounds = array<i64: 1, 2, 2>, scalar_prefetch = 1 : i64, scratch_operands = 3 : i64, tpu.core_type = #tpu.core_type<tc>, window_params = [{transform_indices = @transform_0, window_bounds = array<i64: 2, 8, 32>}, {transform_indices = @transform_1, window_bounds = array<i64: 2, 16, 32>}, {transform_indices = @transform_2, window_bounds = array<i64: 2, 16, 32>}, {transform_indices = @transform_3, window_bounds = array<i64: 2, 8, 32>}]} {
    %c0_i32 = arith.constant 0 : i32
    %0 = arith.cmpi eq, %arg2, %c0_i32 : i32
    %1 = arith.extui %0 : i1 to i32
    %c0_i32_0 = arith.constant 0 : i32
    %2 = arith.cmpi ne, %1, %c0_i32_0 : i32
    scf.if %2 {
      %cst_32 = arith.constant 0xFF800000 : f32
      %35 = vector.broadcast %cst_32 : f32 to vector<2x8x1xf32>
      %c0_33 = arith.constant 0 : index
      %c0_34 = arith.constant 0 : index
      %c0_35 = arith.constant 0 : index
      %36 = vector.load %arg8[%c0_33, %c0_34, %c0_35] : memref<2x8x1xf32, #tpu.memory_space<vmem>>, vector<2x8x1xf32>
      tpu.vector_store %arg8[%c0_33, %c0_34, %c0_35], %35 {strides = array<i32>} : memref<2x8x1xf32, #tpu.memory_space<vmem>>, vector<2x8x1xf32>,
      %cst_36 = arith.constant 0.000000e+00 : f32
      %37 = vector.broadcast %cst_36 : f32 to vector<2x8x1xf32>
      %c0_37 = arith.constant 0 : index
      %c0_38 = arith.constant 0 : index
      %c0_39 = arith.constant 0 : index
      %38 = vector.load %arg9[%c0_37, %c0_38, %c0_39] : memref<2x8x1xf32, #tpu.memory_space<vmem>>, vector<2x8x1xf32>
      tpu.vector_store %arg9[%c0_37, %c0_38, %c0_39], %37 {strides = array<i32>} : memref<2x8x1xf32, #tpu.memory_space<vmem>>, vector<2x8x1xf32>,
      %cst_40 = arith.constant 0.000000e+00 : f32
      %39 = vector.broadcast %cst_40 : f32 to vector<2x8x32xf32>
      %c0_41 = arith.constant 0 : index
      %c0_42 = arith.constant 0 : index
      %c0_43 = arith.constant 0 : index
      %40 = vector.load %arg10[%c0_41, %c0_42, %c0_43] : memref<2x8x32xf32, #tpu.memory_space<vmem>>, vector<2x8x32xf32>
      tpu.vector_store %arg10[%c0_41, %c0_42, %c0_43], %39 {strides = array<i32>} : memref<2x8x32xf32, #tpu.memory_space<vmem>>, vector<2x8x32xf32>,
    } else {
    }
    %c0 = arith.constant 0 : index
    %3 = memref.load %arg3[%c0] : memref<1xf32, #tpu.memory_space<smem>>
    %c0_1 = arith.constant 0 : index
    %c0_2 = arith.constant 0 : index
    %c0_3 = arith.constant 0 : index
    %4 = vector.load %arg4[%c0_1, %c0_2, %c0_3] : memref<2x8x32xf32, #tpu.memory_space<vmem>>, vector<2x8x32xf32>
    %5 = vector.broadcast %3 : f32 to vector<2x8x32xf32>
    %6 = arith.mulf %4, %5 : vector<2x8x32xf32>
    %c0_4 = arith.constant 0 : index
    %c0_5 = arith.constant 0 : index
    %c0_6 = arith.constant 0 : index
    %7 = vector.load %arg5[%c0_4, %c0_5, %c0_6] : memref<2x16x32xf32, #tpu.memory_space<vmem>>, vector<2x16x32xf32>
    %cst = arith.constant dense<0.000000e+00> : vector<2x8x16xf32>
    %8 = tpu.matmul %6, %7, %cst {dimension_numbers = #tpu.dot_dimension_numbers<[2], [2], [1], [1], [0, 0, 0, 1, 1, 1], [0], [0]>} : vector<2x8x32xf32>, vector<2x16x32xf32>, vector<2x8x16xf32> -> vector<2x8x16xf32>
    %c0_7 = arith.constant 0 : index
    %c0_8 = arith.constant 0 : index
    %c0_9 = arith.constant 0 : index
    %9 = vector.load %arg8[%c0_7, %c0_8, %c0_9] : memref<2x8x1xf32, #tpu.memory_space<vmem>>, vector<2x8x1xf32>
    %cst_10 = arith.constant dense<0xFF800000> : vector<2x8xf32>
    %10 = vector.multi_reduction <maximumf>, %8, %cst_10 [2] : vector<2x8x16xf32> to vector<2x8xf32>
    %11 = vector.shape_cast %10 : vector<2x8xf32> to vector<2x8x1xf32>
    %12 = arith.maximumf %9, %11 : vector<2x8x1xf32>
    %13 = arith.subf %9, %12 : vector<2x8x1xf32>
    %14 = math.exp %13 : vector<2x8x1xf32>
    %15 = vector.broadcast %12 : vector<2x8x1xf32> to vector<2x8x16xf32>
    %16 = arith.subf %8, %15 : vector<2x8x16xf32>
    %17 = math.exp %16 : vector<2x8x16xf32>
    %c0_11 = arith.constant 0 : index
    %c0_12 = arith.constant 0 : index
    %c0_13 = arith.constant 0 : index
    %18 = vector.load %arg9[%c0_11, %c0_12, %c0_13] : memref<2x8x1xf32, #tpu.memory_space<vmem>>, vector<2x8x1xf32>
    %19 = arith.mulf %14, %18 : vector<2x8x1xf32>
    %cst_14 = arith.constant dense<0.000000e+00> : vector<2x8xf32>
    %20 = vector.multi_reduction <add>, %17, %cst_14 [2] : vector<2x8x16xf32> to vector<2x8xf32>
    %21 = vector.shape_cast %20 : vector<2x8xf32> to vector<2x8x1xf32>
    %22 = arith.addf %19, %21 : vector<2x8x1xf32>
    %c0_15 = arith.constant 0 : index
    %c0_16 = arith.constant 0 : index
    %c0_17 = arith.constant 0 : index
    %23 = vector.load %arg9[%c0_15, %c0_16, %c0_17] : memref<2x8x1xf32, #tpu.memory_space<vmem>>, vector<2x8x1xf32>
    tpu.vector_store %arg9[%c0_15, %c0_16, %c0_17], %22 {strides = array<i32>} : memref<2x8x1xf32, #tpu.memory_space<vmem>>, vector<2x8x1xf32>,
    %c0_18 = arith.constant 0 : index
    %c0_19 = arith.constant 0 : index
    %c0_20 = arith.constant 0 : index
    %24 = vector.load %arg10[%c0_18, %c0_19, %c0_20] : memref<2x8x32xf32, #tpu.memory_space<vmem>>, vector<2x8x32xf32>
    %25 = vector.broadcast %14 : vector<2x8x1xf32> to vector<2x8x32xf32>
    %26 = arith.mulf %25, %24 : vector<2x8x32xf32>
    %c0_21 = arith.constant 0 : index
    %c0_22 = arith.constant 0 : index
    %c0_23 = arith.constant 0 : index
    %27 = vector.load %arg6[%c0_21, %c0_22, %c0_23] : memref<2x16x32xf32, #tpu.memory_space<vmem>>, vector<2x16x32xf32>
    %cst_24 = arith.constant dense<0.000000e+00> : vector<2x8x32xf32>
    %28 = tpu.matmul %17, %27, %cst_24 {dimension_numbers = #tpu.dot_dimension_numbers<[2], [1], [1], [2], [0, 0, 0, 1, 1, 2], [0], [0]>} : vector<2x8x16xf32>, vector<2x16x32xf32>, vector<2x8x32xf32> -> vector<2x8x32xf32>
    %29 = arith.addf %26, %28 : vector<2x8x32xf32>
    %c0_25 = arith.constant 0 : index
    %c0_26 = arith.constant 0 : index
    %c0_27 = arith.constant 0 : index
    %30 = vector.load %arg10[%c0_25, %c0_26, %c0_27] : memref<2x8x32xf32, #tpu.memory_space<vmem>>, vector<2x8x32xf32>
    tpu.vector_store %arg10[%c0_25, %c0_26, %c0_27], %29 {strides = array<i32>} : memref<2x8x32xf32, #tpu.memory_space<vmem>>, vector<2x8x32xf32>,
    %c0_28 = arith.constant 0 : index
    %c0_29 = arith.constant 0 : index
    %c0_30 = arith.constant 0 : index
    %31 = vector.load %arg8[%c0_28, %c0_29, %c0_30] : memref<2x8x1xf32, #tpu.memory_space<vmem>>, vector<2x8x1xf32>
    tpu.vector_store %arg8[%c0_28, %c0_29, %c0_30], %12 {strides = array<i32>} : memref<2x8x1xf32, #tpu.memory_space<vmem>>, vector<2x8x1xf32>,
    %c1_i32 = arith.constant 1 : i32
    %32 = arith.cmpi eq, %arg2, %c1_i32 : i32
    %33 = arith.extui %32 : i1 to i32
    %c0_i32_31 = arith.constant 0 : i32
    %34 = arith.cmpi ne, %33, %c0_i32_31 : i32
    scf.if %34 {
      %c0_32 = arith.constant 0 : index
      %c0_33 = arith.constant 0 : index
      %c0_34 = arith.constant 0 : index
      %35 = vector.load %arg9[%c0_32, %c0_33, %c0_34] : memref<2x8x1xf32, #tpu.memory_space<vmem>>, vector<2x8x1xf32>
      %36 = tpu.reciprocal %35 {approx = true} : vector<2x8x1xf32> -> vector<2x8x1xf32>
      %37 = arith.mulf %35, %36 : vector<2x8x1xf32>
      %cst_35 = arith.constant 2.000000e+00 : f32
      %38 = vector.broadcast %cst_35 : f32 to vector<2x8x1xf32>
      %39 = arith.subf %38, %37 : vector<2x8x1xf32>
      %40 = arith.mulf %36, %39 : vector<2x8x1xf32>
      %c0_36 = arith.constant 0 : index
      %c0_37 = arith.constant 0 : index
      %c0_38 = arith.constant 0 : index
      %41 = vector.load %arg10[%c0_36, %c0_37, %c0_38] : memref<2x8x32xf32, #tpu.memory_space<vmem>>, vector<2x8x32xf32>
      %42 = vector.broadcast %40 : vector<2x8x1xf32> to vector<2x8x32xf32>
      %43 = arith.mulf %41, %42 : vector<2x8x32xf32>
      %c0_39 = arith.constant 0 : index
      %c0_40 = arith.constant 0 : index
      %c0_41 = arith.constant 0 : index
      %44 = vector.load %arg7[%c0_39, %c0_40, %c0_41] : memref<2x8x32xf32, #tpu.memory_space<vmem>>, vector<2x8x32xf32>
      tpu.vector_store %arg7[%c0_39, %c0_40, %c0_41], %43 {strides = array<i32>} : memref<2x8x32xf32, #tpu.memory_space<vmem>>, vector<2x8x32xf32>,
    } else {
    }
    return
  }
  func.func @transform_0(%arg0: i32, %arg1: i32, %arg2: i32, %arg3: memref<1xf32, #tpu.memory_space<smem>>) -> (i32, i32, i32) {
    %c0_i32 = arith.constant 0 : i32
    %c0_i32_0 = arith.constant 0 : i32
    return %arg0, %arg1, %c0_i32 : i32, i32, i32
  }
  func.func @transform_1(%arg0: i32, %arg1: i32, %arg2: i32, %arg3: memref<1xf32, #tpu.memory_space<smem>>) -> (i32, i32, i32) {
    %c0_i32 = arith.constant 0 : i32
    %c0_i32_0 = arith.constant 0 : i32
    return %arg0, %arg2, %c0_i32 : i32, i32, i32
  }
  func.func @transform_2(%arg0: i32, %arg1: i32, %arg2: i32, %arg3: memref<1xf32, #tpu.memory_space<smem>>) -> (i32, i32, i32) {
    %c0_i32 = arith.constant 0 : i32
    %c0_i32_0 = arith.constant 0 : i32
    return %arg0, %arg2, %c0_i32 : i32, i32, i32
  }
  func.func @transform_3(%arg0: i32, %arg1: i32, %arg2: i32, %arg3: memref<1xf32, #tpu.memory_space<smem>>) -> (i32, i32, i32) {
    %c0_i32 = arith.constant 0 : i32
    %c0_i32_0 = arith.constant 0 : i32
    return %arg0, %arg1, %c0_i32 : i32, i32, i32
  }
}

</mosaic_0001>

<bundles_post_ra>
// kernel: tpu_custom_call.1
= control target key start
LH: loop header
LB: loop body
LE: loop exit
PB: predicated region body
PF: predicated region fallthrough
CT: control target
= control target key end

     0   :  { %s1440_s0 = inlined_call_operand.<no memory space> [shape: f32[1], index: 0, kind: input, shape index: {}]   ;;  %s1441_s1 = inlined_call_operand.hbm [shape: f32[2,16,32], index: 1, kind: input, shape index: {}]   ;;  %s1442_s2 = inlined_call_operand.hbm [shape: f32[2,32,32], index: 2, kind: input, shape index: {}]   ;;  %s1443_s3 = inlined_call_operand.hbm [shape: f32[2,32,32], index: 3, kind: input, shape index: {}]   ;;  %s1444_s4 = inlined_call_operand.hbm [shape: f32[2,16,32], index: 4, kind: output, shape index: {}]  }
   0x1   :  { %1452 = sst [smem:[#allocation30_spill]] %s1441_s1 }
   0x2   :  { %1453 = sst [smem:[#allocation31_spill]] %s1444_s4 }
   0x3   :  { %9 = sst [smem:[#allocation6]] %s1440_s0 }
   0x4   :  { %10 = vsyncpa [#allocation8], 0 }
   0x5   :  { %12 = vsyncpa [#allocation8 + $0x1], 0 }
   0x6   :  { %13 = vsyncpa [#allocation11], 0 }
   0x7   :  { %15 = vsyncpa [#allocation11 + $0x1], 0 }
   0x8   :  { %16 = vsyncpa [#allocation9], 0 }
   0x9   :  { %18 = vsyncpa [#allocation9 + $0x1], 0  ;;  %s1148_s17 = smov 0   ;;  %s1150_s18 = smov 0  }
   0xa   :  { %s1152_s19 = smov 0   ;;  %s1154_s20 = smov 0  }
   0xb   :  { %s1156_s21 = smov 0   ;;  %s1158_s22 = smov 0  }
   0xc   :  { %s1160_s23 = smov 0   ;;  %s1162_s0 = smov 0  }
   0xd   :  { %s1164_s24 = smov 0   ;;  %s1166_s25 = smov 0  }
   0xe   :  { %s1168_s26 = smov 0  }
   0xf LB: > { %1454 = sst [smem:[#allocation23_spill]] %s1068_s20  ;;  %s1204_s27 = sadd.s32 4294967295, %s1096_s26   ;;  %s1096_s26 = sphi %s1168_s26, %s24_s26   ;;  %s1092_s25 = sphi %s1166_s25, %s1476_s25   ;;  %s1088_s24 = sphi %s1164_s24, %s1484_s24   ;;  %s1084_s0 = sphi %s1162_s0, %s1474_s0   ;;  %s1080_s23 = sphi %s1160_s23, %s1483_s23   ;;  %s1076_s22 = sphi %s1158_s22, %s1482_s22   ;;  %s1072_s21 = sphi %s1156_s21, %s1481_s21   ;;  %s1068_s20 = sphi %s1154_s20, %s1480_s20   ;;  %s1064_s19 = sphi %s1152_s19, %s1479_s19   ;;  %s1060_s18 = sphi %s1150_s18, %s1478_s18   ;;  %s1056_s17 = sphi %s1148_s17, %s1477_s17  }
  0x10   : > { %1455 = sst [smem:[#allocation24_spill]] %s1092_s25  ;;  %s753_s28 = sadd.s32 4294967294, %s1096_s26  }
  0x11   : > { %s36_s29 = sadd.s32 1, %s1088_s24  ;;  %s39_s30 = sadd.s32 1, %s1092_s25 }
  0x12   : > { %p37_p0 = scmp.ge.s32.totalorder %s36_s29, 2  ;;  %s52_s5 = sadd.s32 1, %s1076_s22 }
  0x13   : > { %p59_p1 = scmp.ne.s32.totalorder %s1076_s22, %s1072_s21  ;;  %p60_p2 = scmp.eq.s32.totalorder %s1096_s26, 0 }
  0x14   : > { %s1486_s29 = smov (%p37_p0, %s36_s29), 0  ;;  %s1488_s30 = smov (!%p37_p0, %s39_s30), %s1092_s25 }
  0x15   : > { %1456 = sst [smem:[#allocation25_spill]] %s1486_s29  ;;  %p1221_p3 = por %p60_p2, %p59_p1 }
  0x16   : > { %p1445_p4 = scmp.ne.s32.totalorder %s1072_s21, %s1068_s20  ;;  %p41_p5 = scmp.ge.s32.totalorder %s1488_s30, 2 }
  0x17   : > { %p66_p6 = scmp.eq.s32.totalorder %s1204_s27, 0  ;;  %s76_s7 = ssub.s32 %s1088_s24, %s1486_s29 }
  0x18   : > { %s80_s8 = sadd.s32 1, %s1064_s19  ;;  %s1490_s30 = smov (%p41_p5, %s1488_s30), 0 }
  0x19   : > { %1458 = sst [smem:[#allocation26_spill]] %s1490_s30  ;;  %p1238_p7 = por %p66_p6, %p1445_p4 }
  0x1a   : > { %p78_p8 = scmp.eq.s32.totalorder %s76_s7, 0  ;;  %s48_s10 = ssub.s32 %s1092_s25, %s1490_s30 }
  0x1b   : > { %p87_p9 = scmp.ne.s32.totalorder %s1064_s19, %s1060_s18  ;;  %p50_p10 = scmp.eq.s32.totalorder %s48_s10, 0 }
  0x1c   : > { %p93_p11 = scmp.ne.s32.totalorder %s1060_s18, %s1056_s17  ;;  %p147_p0 = scmp.eq.s32.totalorder %s1204_s27, 3 }
  0x1d   : > { %s1249_s11 = scalar_select %p78_p8, %s1064_s19, %s80_s8  }
  0x1e   : > { %s1252_s12 = scalar_select %p50_p10, %s1076_s22, %s52_s5  }
  0x1f   : > { %1460 = sst [smem:[#allocation27_spill]] %s1249_s11  ;;  %p1256_p12 = por %p87_p9, %p60_p2 }
  0x20   : > { %1461 = sst [smem:[#allocation28_spill]] %s1252_s12  ;;  %p1262_p13 = por %p93_p11, %p66_p6 }
  0x21   : > { %p153_p5 = scmp.eq.s32.totalorder %s753_s28, 3  ;;  %p1270_p4 = por %p147_p0, %p59_p1 }
  0x22   : > { %p1465_p8 = scmp.ne.s32.totalorder %s1072_s21, %s1068_s20  ;;  %p755_p2 = scmp.ge.s32.totalorder %s1096_s26, 4 }
  0x23   : > { %s173_s17 = sand.u32 (!%p755_p2), 1, %s1076_s22   ;;  %s757_s5 = sshll.u32 (!%p755_p2), %s1092_s25, 3 }
  0x24   : > { %p1277_p10 = por %p153_p5, %p1465_p8  ;;  %169 = sbr.rel (%p755_p2) target bundleno = 73 (0x49), region = 16 }
  0x25   : > { %s756_s7 = sshll.u32 (!%p755_p2), %s173_s17, 4  ;;  %s1468_s1 = sld [smem:[#allocation30_spill]] (!%p755_p2) }
  0x26   : > { %s1466_s16 = scalar_select %p1277_p10, 1, 0 }
  0x27   : > { %s177_s29 = scalar_lea.vmem (!%p755_p2), [#allocation7], %s756_s7  ;;  %s174_s11 = scalar_lea.sflag (!%p755_p2), [#allocation8], %s173_s17 }
  0x28   : > { %1467 = sst [smem:[#allocation29_spill]] %s1466_s16  ;;  %s187_s12 = sshll.u32 (!%p755_p2), %s177_s29, 4  ;;  %s188_s12 = int_to_ptr.vmem [resolvable:$true] %s187_s12 }
  0x29   : > { %s1098_s16 = smov 256   ;;  %s1099_s20 = smov 128  }
  0x2a   : > { %s1100_s4 = smov 8  }
  0x2b   : > { %s184_s10 = scalar_lea.hbm %s1468_s1, %s757_s5 }
  0x2c   : > { %s185_s30 = sshll.u32 %s184_s10, 4  ;;  %s186_s30 = int_to_ptr.hbm [resolvable:$true] %s185_s30 }
  0x2d   : > { %789 = dma.hbm_to_vmem [thread:$0]  (%p1221_p3), %s186_s30, 256, %s188_s12, %s174_s11, %s1098_s16, %s1099_s20, %s1100_s4  }
  0x2e   : > { %s197_s25 = sand.u32 1, %s1096_s26   ;;  %s199_s28 = sand.u32 1, %s1064_s19  }
  0x2f   : > { %s1291_s5 = sshll.u32 %s199_s28, 5  ;;  %s787_s29 = sshll.u32 %s1088_s24, 4 }
  0x30   : > { %s209_s8 = scalar_lea.hbm %s1442_s2, %s787_s29  ;;  %s201_s6 = scalar_lea.vmem [#allocation10], %s1291_s5 }
  0x31   : > { %s224_s4 = sshll.u32 %s201_s6, 4  ;;  %s222_s30 = sshll.u32 %s209_s8, 4  ;;  %s225_s4 = int_to_ptr.vmem [resolvable:$true] %s224_s4  ;;  %s223_s30 = int_to_ptr.hbm [resolvable:$true] %s222_s30 }
  0x32   : > { %s790_s20 = scalar_select %p1256_p12, [#allocation0], [#allocation18] }
  0x33   : > { %s1101_s12 = smov 512   ;;  %s1102_s16 = smov 256  }
  0x34   : > { %s214_s11 = sld [smem:[%s790_s20]]   ;;  %s1103_s10 = smov 2  }
  0x35   : > { %791 = sst [smem:[#allocation15]] (%p1256_p12), %s1101_s12  ;;  %s1104_s28 = smov 128  }
  0x36   : > { %792 = sst [smem:[#allocation15 + $0x1]] (%p1256_p12), %s1102_s16  ;;  %s1105_s8 = smov 8  }
  0x37   : > { %793 = sst [smem:[#allocation15 + $0x2]] (%p1256_p12), %s1103_s10  ;;  %s198_s6 = scalar_lea.sflag [#allocation11], %s197_s25 }
  0x38   : > { %794 = sst [smem:[#allocation15 + $0x3]] (%p1256_p12), %s1104_s28  ;;  %s1106_s20 = smov [#allocation14]  }
  0x39   : > { %795 = sst [smem:[#allocation15 + $0x4]] (%p1256_p12), %s1104_s28 }
  0x3a   : > { %s761_s7 = sshll.u32 %s214_s11, 26  ;;  %796 = sst [smem:[#allocation15 + $0x5]] (%p1256_p12), %s1105_s8 }
  0x3b   : > { %s762_s17 = sadd.s32 134217728, %s761_s7 }
  0x3c   : > { %797 = dma.general (%p1256_p12), %s223_s30, 512, %s225_s4, %s198_s6, %s1106_s20, [#allocation15], %s762_s17, 0  }
  0x3d   : > { %s259_s11 = scalar_lea.hbm %s1443_s3, %s787_s29  ;;  %s251_s28 = scalar_lea.vmem [#allocation12], %s1291_s5 }
  0x3e   : > { %s798_s16 = scalar_select %p1256_p12, [#allocation0], [#allocation19] }
  0x3f   : > { %s272_s10 = sshll.u32 %s259_s11, 4  ;;  %s274_s7 = sshll.u32 %s251_s28, 4  ;;  %s273_s10 = int_to_ptr.hbm [resolvable:$true] %s272_s10  ;;  %s275_s7 = int_to_ptr.vmem [resolvable:$true] %s274_s7 }
  0x40   : > { %s264_s25 = sld [smem:[%s798_s16]]   ;;  %s1107_s4 = smov 512  }
  0x41   : > { %799 = sst [smem:[#allocation17]] (%p1256_p12), %s1107_s4  ;;  %s1108_s1 = smov 256  }
  0x42   : > { %800 = sst [smem:[#allocation17 + $0x1]] (%p1256_p12), %s1108_s1  ;;  %s1109_s30 = smov 2  }
  0x43   : > { %801 = sst [smem:[#allocation17 + $0x2]] (%p1256_p12), %s1109_s30  ;;  %s1110_s29 = smov 128  }
  0x44   : > { %802 = sst [smem:[#allocation17 + $0x3]] (%p1256_p12), %s1110_s29  ;;  %s1111_s8 = smov 8  }
  0x45   : > { %803 = sst [smem:[#allocation17 + $0x4]] (%p1256_p12), %s1110_s29  ;;  %s1112_s20 = smov [#allocation16]  }
  0x46   : > { %s766_s17 = sshll.u32 %s264_s25, 26  ;;  %804 = sst [smem:[#allocation17 + $0x5]] (%p1256_p12), %s1111_s8 }
  0x47   : > { %s767_s5 = sadd.s32 134217728, %s766_s17 }
  0x48   : > { %805 = dma.general (%p1256_p12), %s273_s10, 512, %s275_s7, %s198_s6, %s1112_s20, [#allocation17], %s767_s5, 0  }
  0x49 PF: > { %p768_p1 = scmp.ge.s32.totalorder %s1096_s26, 1  ;;  %p295_p3 = scmp.lt.s32.totalorder %s1096_s26, 5 }
  0x4b   : > { %p296_p6 = pnand %p768_p1, %p295_p3 }
  0x4c   : > { %s1337_s12 = sand.u32 (!%p296_p6), 1, %s1072_s21  }
  0x4d   : > { %299 = sbr.rel (%p296_p6) target bundleno = 787 (0x313), region = 32  ;;  %s769_s11 = sshll.u32 (!%p296_p6), %s1337_s12, 4 }
  0x4e   : > { %s302_s16 = scalar_lea.sflag (!%p296_p6), [#allocation8], %s1337_s12  ;;  %s1341_s28 = scalar_lea.vmem (!%p296_p6), [#allocation7], %s769_s11 }
  0x52   : > { %1043 = dma.done.wait (%p1238_p7), %s302_s16, 256  }
  0x53   : > { %1045 = vsyncadd (%p1238_p7), %s302_s16, 4294967040  ;;  %s311_s13 = sand.u32 1, %s1204_s27   ;;  %s313_s6 = sand.u32 1, %s1060_s18  }
  0x54   : > { %s770_s10 = sshll.u32 %s313_s6, 5  ;;  %s312_s7 = scalar_lea.sflag [#allocation11], %s311_s13 }
  0x55   : > { %s315_s25 = scalar_lea.vmem [#allocation10], %s770_s10 }
  0x56   : > { %1047 = dma.done.wait (%p1262_p13), %s312_s7, 1024  }
  0x57   : > { %1049 = vsyncadd (%p1262_p13), %s312_s7, 4294966272  ;;  %s1353_s4 = scalar_lea.vmem [#allocation12], %s770_s10  ;;  %s1355_s1 = scalar_lea.vmem [#allocation13], %s769_s11 }
  0x58   : > { %p773_p9 = scmp.ne.s32.totalorder %s1080_s23, 0 }
  0x5a   : > { %368 = sbr.rel (%p773_p9) target bundleno = 102 (0x66), region = 48 }
  0x5f   : > { %vm369_vm0 = vcmask 7168   ;;  %v1113_v0 = vmov -inf   ;;  %vm374_vm1 = vcmask 261120   ;;  %v1114_v1 = vmov 0.0  }
  0x60   : > { %370 = vst.msk [vmem:[#allocation2] sm:$0xff] %vm369_vm0, %v1113_v0 }
  0x61   : > { %371 = vst.msk [vmem:[#allocation2 + $0x8] sm:$0xff] %vm369_vm0, %v1113_v0 }
  0x62   : > { %372 = vst.msk [vmem:[#allocation3] sm:$0xff] %vm369_vm0, %v1114_v1 }
  0x63   : > { %373 = vst.msk [vmem:[#allocation3 + $0x8] sm:$0xff] %vm369_vm0, %v1114_v1 }
  0x64   : > { %375 = vst.msk [vmem:[#allocation4] sm:$0xff] %vm374_vm1, %v1114_v1 }
  0x65   : > { %376 = vst.msk [vmem:[#allocation4 + $0x8] sm:$0xff] %vm374_vm1, %v1114_v1 }
  0x66 PF: > { %v384_v2 = vld [vmem:[%s315_s25 + $0x8] sm:$0xff]  ;;  %vm387_vm2 = vcmask 261120   ;;  %s377_s27 = sld [smem:[#allocation6]]  ;;  %v386_v3 = vld [vmem:[%s315_s25 + $0x18] sm:$0xff]  ;;  %v383_v4 = vld [vmem:[%s315_s25] sm:$0xff]  ;;  %vm448_vm3 = vcmask 130048  }
  0x67   : > { %774 = vmatpush.xpose.msk.msra.mxu0 %vm387_vm2, %v384_v2  ;;  %777 = vmatpush.xpose.msk.msra.mxu1 %vm387_vm2, %v386_v3  ;;  %v385_v5 = vld [vmem:[%s315_s25 + $0x10] sm:$0xff]  ;;  %v379_v7 = vld [vmem:[%s1341_s28 + $0x8] sm:$0xff]  ;;  %v1115_v15 = vmov 0   ;;  %vm491_vm4 = vcmask 7168   ;;  %v508_v29 = vld [vmem:[%s1353_s4] sm:$0xff]  ;;  %p782_p7 = scmp.ne.s32.totalorder %s1080_s23, 1 }
  0x68   : > { %v378_v6 = vld [vmem:[%s1341_s28] sm:$0xff]  ;;  %926 = vset.pattern.permute.xlu1 %v1115_v15  ;;  %927 = vset.pattern.permute.xlu2 %v1115_v15  ;;  %v447_v21 = vld [vmem:[#allocation2 + $0x8] sm:$0xff]  ;;  %v509_v28 = vld [vmem:[%s1353_s4 + $0x8] sm:$0xff] }
  0x69   : > { %928 = vset.pattern.permute.xlu0 %v1115_v15  ;;  %v446_v16 = vld [vmem:[#allocation2] sm:$0xff]  ;;  %529 = vmatpush.msra.mxu2 %v509_v28  ;;  %v511_v30 = vld [vmem:[%s1353_s4 + $0x18] sm:$0xff]  ;;  %v479_v42 = vld [vmem:[#allocation3] sm:$0xff] }
  0x6a   : > { %v510_v31 = vld [vmem:[%s1353_s4 + $0x10] sm:$0xff]  ;;  %552 = vmatpush.msra.mxu3 %v511_v30  ;;  %v480_v46 = vld [vmem:[#allocation3 + $0x8] sm:$0xff] }
  0x6b   : > { %775 = vmatpush.xpose.msk.msra.mxu0 %vm387_vm2, %v383_v4  ;;  %778 = vmatpush.xpose.msk.msra.mxu1 %vm387_vm2, %v385_v5  ;;  %v494_v51 = vld [vmem:[#allocation4] sm:$0xff] }
  0x6c   : > { %v380_v8 = vstv %s377_s27  ;;  %530 = vmatpush.msra.mxu2 %v508_v29  ;;  %553 = vmatpush.msra.mxu3 %v510_v31  ;;  %v495_v55 = vld [vmem:[#allocation4 + $0x8] sm:$0xff] }
  0x6d   : > { %v381_v9 = vmul.f32 %v380_v8, %v378_v6  ;;  %v382_v10 = vmul.f32 %v380_v8, %v379_v7 }
  0x6f   : > { %776 = vmatmul.msk.f32.vlgmr.msra.gmra.mxu0 %vm387_vm2, %v381_v9  ;;  %779 = vmatmul.msk.f32.vlgmr.msra.gmra.mxu1 %vm387_vm2, %v382_v10 }
  0xec   : > { %v414_v11 = vpop.f32.mrf.mxu0  ;;  %v443_v13 = vpop.f32.mrf.mxu1 }
  0xed   : > { %v449_v12 = vsel %vm448_vm3, %v414_v11, -inf  ;;  %v452_v14 = vsel %vm448_vm3, %v443_v13, -inf }
  0xee   : > { %450 = vmax.xlane.f32.xlu0 %v449_v12 }
  0xf6   : > { %453 = vmax.xlane.f32.xlu0 %v452_v14 }
 0x161   : > { %v451_v17 = vpop.xlane.xlu0 %450 }
 0x162   : > { %v455_v18 = vmax.f32 %v446_v16, %v451_v17 }
 0x164   : > { %v457_v19 = vsub.f32 %v446_v16, %v455_v18  ;;  %562 = vst.msk [vmem:[#allocation2] sm:$0xff] %vm491_vm4, %v455_v18  ;;  %465 = vperm.xlu1 %926, %v455_v18  }
 0x166   : > { %v459_v20 = vmul.f32 1.442695, %v457_v19 }
 0x168   : > { %929 = vpow2.f32 %v459_v20 }
 0x169   : > { %v454_v22 = vpop.xlane.xlu0 %453 }
 0x16a   : > { %v456_v23 = vmax.f32 %v447_v21, %v454_v22 }
 0x16c   : > { %v458_v24 = vsub.f32 %v447_v21, %v456_v23  ;;  %563 = vst.msk [vmem:[#allocation2 + $0x8] sm:$0xff] %vm491_vm4, %v456_v23  ;;  %470 = vperm.xlu1 %926, %v456_v23  }
 0x16e   : > { %v930_v25 = vpop.eup %929  ;;  %v461_v26 = vmul.f32 1.442695, %v458_v24 }
 0x16f   : > { %498 = vperm.xlu2 %927, %v930_v25   ;;  %v481_v43 = vmul.f32 %v930_v25, %v479_v42 }
 0x170   : > { %931 = vpow2.f32 %v461_v26 }
 0x176   : > { %v932_v27 = vpop.eup %931 }
 0x177   : > { %503 = vperm.xlu2 %927, %v932_v27   ;;  %v482_v47 = vmul.f32 %v932_v27, %v480_v46 }
 0x1c9   : > { %v499_v49 = vpop.permute.xlu2 %498 }
 0x1ca   : > { %v506_v52 = vmul.f32 %v499_v49, %v494_v51 }
 0x1d1   : > { %v504_v56 = vpop.permute.xlu2 %503 }
 0x1d2   : > { %v507_v57 = vmul.f32 %v504_v56, %v495_v55 }
 0x1d6   : > { %v466_v32 = vpop.permute.xlu1 %465 }
 0x1d7   : > { %v473_v33 = vsub.f32 %v414_v11, %v466_v32 }
 0x1d9   : > { %v475_v34 = vmul.f32 1.442695, %v473_v33 }
 0x1db   : > { %933 = vpow2.f32 %v475_v34 }
 0x1de   : > { %v471_v35 = vpop.permute.xlu1 %470 }
 0x1df   : > { %v474_v36 = vsub.f32 %v443_v13, %v471_v35 }
 0x1e1   : > { %v934_v37 = vpop.eup %933  ;;  %v477_v38 = vmul.f32 1.442695, %v474_v36 }
 0x1e2   : > { %780 = vmatmul.msk.f32.vlgmr.msra.gmra.mxu2 %vm448_vm3, %v934_v37  ;;  %v483_v39 = vsel %vm448_vm3, %v934_v37, 0.0 }
 0x1e3   : > { %935 = vpow2.f32 %v477_v38  ;;  %484 = vadd.xlane.f32.xlu0 %v483_v39 }
 0x1e9   : > { %v936_v40 = vpop.eup %935 }
 0x1ea   : > { %781 = vmatmul.msk.f32.vlgmr.msra.gmra.mxu3 %vm448_vm3, %v936_v40  ;;  %v486_v41 = vsel %vm448_vm3, %v936_v40, 0.0 }
 0x1eb   : > { %487 = vadd.xlane.f32.xlu1 %v486_v41 }
 0x256   : > { %v485_v44 = vpop.xlane.xlu0 %484 }
 0x257   : > { %v489_v45 = vadd.f32 %v485_v44, %v481_v43 }
 0x259   : > { %492 = vst.msk [vmem:[#allocation3] sm:$0xff] %vm491_vm4, %v489_v45 }
 0x25e   : > { %v488_v48 = vpop.xlane.xlu1 %487 }
 0x25f   : > { %v490_v50 = vadd.f32 %v488_v48, %v482_v47 }
 0x261   : > { %493 = vst.msk [vmem:[#allocation3 + $0x8] sm:$0xff] %vm491_vm4, %v490_v50 }
 0x265   : > { %v532_v53 = vpop.f32.mrf.mxu2 }
 0x266   : > { %v558_v54 = vadd.f32 %v532_v53, %v506_v52 }
 0x268   : > { %560 = vst.msk [vmem:[#allocation4] sm:$0xff] %vm387_vm2, %v558_v54 }
 0x26c   : > { %567 = sbr.rel (%p782_p7) target bundleno = 765 (0x2fd), region = 52 }
 0x26d   : > { %v555_v58 = vpop.f32.mrf.mxu3 }
 0x26e   : > { %v559_v59 = vadd.f32 %v555_v58, %v507_v57 }
 0x270   : > { %561 = vst.msk [vmem:[#allocation4 + $0x8] sm:$0xff] %vm387_vm2, %v559_v59 }
 0x271   : > { %v568_v60 = vld [vmem:[#allocation3] sm:$0xff]  ;;  %v569_v61 = vld [vmem:[#allocation3 + $0x8] sm:$0xff]  ;;  %v1116_v62 = vmov 0   ;;  %v578_v7 = vld [vmem:[#allocation4] sm:$0xff] }
 0x272   : > { %937 = vset.pattern.permute.xlu0 %v1116_v62  ;;  %938 = vrcp.f32 %v568_v60 }
 0x273   : > { %940 = vrcp.f32 %v569_v61 }
 0x277   : > { %v579_v10 = vld [vmem:[#allocation4 + $0x8] sm:$0xff] }
 0x278   : > { %v939_v63 = vpop.eup %938 }
 0x279   : > { %v941_v0 = vpop.eup %940  ;;  %v572_v1 = vmul.f32 %v939_v63, %v568_v60 }
 0x27a   : > { %v573_v3 = vmul.f32 %v941_v0, %v569_v61 }
 0x27b   : > { %v574_v2 = vsub.f32 2.0, %v572_v1 }
 0x27c   : > { %v575_v5 = vsub.f32 2.0, %v573_v3 }
 0x27d   : > { %v576_v4 = vmul.f32 %v939_v63, %v574_v2 }
 0x27e   : > { %v577_v6 = vmul.f32 %v941_v0, %v575_v5 }
 0x27f   : > { %582 = vperm.xlu0 %937, %v576_v4  }
 0x287   : > { %587 = vperm.xlu0 %937, %v577_v6  }
 0x2f1   : > { %v583_v8 = vpop.permute.xlu0 %582 }
 0x2f2   : > { %v590_v9 = vmul.f32 %v583_v8, %v578_v7 }
 0x2f4   : > { %592 = vst.msk [vmem:[%s1355_s1] sm:$0xff] %vm387_vm2, %v590_v9 }
 0x2f9   : > { %v588_v11 = vpop.permute.xlu0 %587 }
 0x2fa   : > { %v591_v12 = vmul.f32 %v588_v11, %v579_v10 }
 0x2fc   : > { %593 = vst.msk [vmem:[%s1355_s1 + $0x8] sm:$0xff] %vm387_vm2, %v591_v12 }
 0x2fd PF: > { %s784_s23 = sshll.u32 %s1084_s0, 3  ;;  %s1469_s30 = sld [smem:[#allocation31_spill]] }
 0x2fe   : > { %s609_s17 = sshll.u32 %s1355_s1, 4  ;;  %s595_s8 = scalar_lea.sflag [#allocation9], %s1337_s12  ;;  %s610_s17 = int_to_ptr.vmem [resolvable:$true] %s609_s17 }
 0x303   : > { %s608_s29 = scalar_lea.hbm %s1469_s30, %s784_s23  ;;  %s990_s0 = scalar_lea.hbm %s1469_s30, 32 }
 0x304   : > { %s611_s5 = sshll.u32 %s608_s29, 4  ;;  %s612_s5 = int_to_ptr.hbm [resolvable:$true] %s611_s5 }
 0x305   : > { %s984_s20 = sshra.s32 %s612_s5, 4  ;;  %s985_s20 = int_to_ptr.hbm [resolvable:$true] %s984_s20 }
 0x306   : > { %s986_s11 = scalar_lea.hbm %s985_s20, 16  ;;  %p991_p0 = scmp.lt.s32.totalorder %s985_s20, %s1469_s30 }
 0x307   : > { %p987_p11 = scmp.ne.s32.totalorder %s985_s20, %s986_s11  ;;  %p992_p5 = scmp.lt.s32.totalorder %s990_s0, %s986_s11 }
 0x309   : > { %p988_p12 = pnand %p987_p11, %p1270_p4  ;;  %p993_p8 = por %p992_p5, %p991_p0 }
 0x30b   : > { %p989_p13 = pneg %p988_p12 }
 0x30d   : > { %p994_p2 = pnand %p993_p8, %p989_p13 }
 0x30f   : > { %997 = shalt.err (!%p994_p2)
}
 0x310   : > { %s1117_s12 = smov 128   ;;  %s1118_s10 = smov 256  }
 0x311   : > { %s1119_s7 = smov 8  }
 0x312   : > { %809 = dma.vmem_to_hbm [thread:$0]  (%p1270_p4), %s610_s17, 256, %s612_s5, %s595_s8, %s1117_s12, %s1118_s10, %s1119_s7  }
 0x313 PF: > { %s1470_s25 = sld [smem:[#allocation23_spill]]  ;;  %p815_p1 = scmp.ge.s32.totalorder %s1096_s26, 2 }
 0x315   : > { %p812_p3 = pnand %p815_p1, %p1277_p10 }
 0x317   : > { %p813_p6 = pneg %p812_p3 }
 0x319   : > { %s626_s1 = sand.u32 1, %s1470_s25  }
 0x31a   : > { %s627_s27 = scalar_lea.sflag [#allocation9], %s626_s1 }
 0x31b   : > { %1051 = dma.done.wait (%p813_p6), %s627_s27, 256  }
 0x31c   : > { %1053 = vsyncadd (%p813_p6), %s627_s27, 4294967040  ;;  %s24_s26 = sadd.s32 1, %s1096_s26   ;;  %s1472_s23 = sld [smem:[#allocation27_spill]] }
 0x31d   : > { %p21_p9 = scmp.ge.s32.totalorder %s24_s26, 6   ;;  %s1473_s15 = sld [smem:[#allocation28_spill]] }
 0x31e   : > { %s1474_s0 = sld [smem:[#allocation24_spill]]  ;;  %s1477_s17 = smov %s1060_s18 }
 0x31f   : > { %s1475_s9 = sld [smem:[#allocation25_spill]]  ;;  %s1478_s18 = smov %s1064_s19 }
 0x320   : > { %s1476_s25 = sld [smem:[#allocation26_spill]]  ;;  %s1480_s20 = smov %s1072_s21 }
 0x321   : > { %s1481_s21 = smov %s1076_s22  ;;  %23 = sbr.rel (!%p21_p9) target bundleno = 15 (0xf), region = 119 }
 0x322   : > { %s1479_s19 = smov %s1472_s23  ;;  %s1483_s23 = smov %s1088_s24 }
 0x323   : > { %s1482_s22 = smov %s1473_s15 }
 0x325   : > { %s1484_s24 = smov %s1475_s9 }
 0x326   :  { %633 = vsyncpa [#allocation8], 1 }
 0x327   :  { %635 = vsyncpa [#allocation8 + $0x1], 1 }
 0x328   :  { %636 = vsyncpa [#allocation11], 1 }
 0x329   :  { %638 = vsyncpa [#allocation11 + $0x1], 1 }
 0x32a   :  { %639 = vsyncpa [#allocation9], 1 }
 0x32b   :  { %641 = vsyncpa [#allocation9 + $0x1], 1 }

</bundles_post_ra>
